<compile_context>
chip_gen: v7x
topology: tpu7x:2x2x1
jax: 0.10.0
libtpu: 0.0.40
codegen_flags: <defaults>
</compile_context>

<pallas_src>
import functools

import jax
import jax.numpy as jnp
from jax import lax
from jax.experimental import pallas as pl
from jax.experimental.pallas import tpu as pltpu

EPS = 0.1
IGNORE_INDEX = -100          # unused by the PyTorch forward(); kept for API parity
_LANES = 128
_SUBLANES = 8
_LOG_CLAMP = -100.0          # PyTorch binary_cross_entropy clamps log() at -100


def _round_up(v, m):
    return ((v + m - 1) // m) * m


def _ls_bce_partial_kernel(x_ref, t_ref, sums_ref, *, n_valid, tile_n, chunk):
    """Per row-block partial sums: S_x -> lane 0, S_bce -> lane 1."""
    i = pl.program_id(0)
    n_chunks = tile_n // chunk          # static Python int (tile_n % chunk == 0)

    def body(j, carry):
        s_x, s_bce = carry              # each (1, 1) f32
        r0 = pl.multiple_of(j * chunk, chunk)

        x = x_ref[pl.ds(r0, chunk), :].astype(jnp.float32)    # (chunk, C)
        t = t_ref[pl.ds(r0, chunk), :].astype(jnp.float32)    # (chunk, C)

        # Rows >= n_valid belong to the out-of-bounds tail of the last grid
        # block; their VMEM contents are undefined, so sanitize BEFORE the
        # logs (no NaN/Inf can leak) and exclude them from the sums.
        rows = (i * tile_n + r0
                + lax.broadcasted_iota(jnp.int32, (chunk, 1), 0))
        valid = rows < n_valid                                  # (chunk, 1)

        x = jnp.where(valid, x, 0.5)
        t = jnp.where(valid, t, 0.0)

        log_p = jnp.maximum(jnp.log(x), _LOG_CLAMP)
        log_1mp = jnp.maximum(jnp.log(1.0 - x), _LOG_CLAMP)
        bce = -(t * log_p + (1.0 - t) * log_1mp)                # (chunk, C)

        s_x = s_x + jnp.sum(jnp.where(valid, x, 0.0), keepdims=True)
        s_bce = s_bce + jnp.sum(jnp.where(valid, bce, 0.0), keepdims=True)
        return s_x, s_bce

    zero = jnp.zeros((1, 1), jnp.float32)
    s_x, s_bce = lax.fori_loop(0, n_chunks, body, (zero, zero))

    # Lane-dense, unmasked (1, 8, 128) store: S_x in lane 0, S_bce in lane 1.
    lane = lax.broadcasted_iota(jnp.int32, sums_ref.shape, 2)
    sums_ref[...] = jnp.where(lane == 0, s_x[0, 0],
                              jnp.where(lane == 1, s_bce[0, 0], 0.0))


def _vmem_limit_bytes():
    """Generation-aware scoped-VMEM budget: ~48 MiB on v7x (64 MiB physical),
    ~96 MiB on v5e/v6e (128 MiB physical)."""
    cap = 64 * 1024 * 1024
    try:
        cap = int(getattr(pltpu.get_tpu_info(), "vmem_capacity_bytes", cap))
    except Exception:
        pass
    return max(16 * 1024 * 1024, min((cap * 3) // 4, 96 * 1024 * 1024))


def _choose_tile(n, c, x_itemsize, t_itemsize, vmem_limit):
    """Largest row tile whose double-buffered (x, t) VMEM footprint (with C
    lane-padded to 128) stays within ~55% of the VMEM budget."""
    c_pad = _round_up(c, _LANES)
    per_row_vmem = c_pad * (x_itemsize + t_itemsize)    # both inputs, one buffer
    input_budget = (vmem_limit * 11) // 20              # ~55%: 2x double-buffering
    tile = input_budget // (2 * max(per_row_vmem, 1))
    tile = max(_SUBLANES, (tile // _SUBLANES) * _SUBLANES)
    return min(tile, _round_up(n, _SUBLANES))


def label_smoothing_bce(output, target, *, eps=EPS, reduction='mean',
                        ignore_index=IGNORE_INDEX, tile_n=None):
    """output: [..., C] probabilities in (0,1); target: [..., C] labels
    (any dtype; cast to f32 happens inside the kernel)."""
    c = output.shape[-1]
    x = output.reshape(-1, c)
    t = target.reshape(-1, c)                 # native dtype -> no extra HBM pass
    n = x.shape[0]

    vmem_limit = _vmem_limit_bytes()
    if tile_n is None:
        tile = _choose_tile(n, c, x.dtype.itemsize, t.dtype.itemsize, vmem_limit)
        # >=2 grid blocks whenever possible so the "parallel" axis can shard
        # across both TensorCores on v7x.
        if n > _SUBLANES and pl.cdiv(n, tile) < 2:
            tile = _round_up(pl.cdiv(n, 2), _SUBLANES)
    else:
        tile = max(_SUBLANES, _round_up(int(tile_n), _SUBLANES))
        tile = min(tile, _round_up(n, _SUBLANES))

    # In-kernel compute chunk: keeps each f32 lane-padded temporary ~<=1 MiB
    # regardless of how big the DMA tile grows.
    c_pad = _round_up(c, _LANES)
    chunk = (1024 * 1024) // (c_pad * 4)
    chunk = max(_SUBLANES, min(512, (chunk // _SUBLANES) * _SUBLANES))
    chunk = min(chunk, tile)
    tile = max(chunk, (tile // chunk) * chunk)        # tile is a chunk multiple

    num_blocks = pl.cdiv(n, tile)
    kernel = functools.partial(_ls_bce_partial_kernel,
                               n_valid=n, tile_n=tile, chunk=chunk)

    out_shape = jax.ShapeDtypeStruct((num_blocks, _SUBLANES, _LANES), jnp.float32)
    bytes_accessed = (x.size * x.dtype.itemsize + t.size * t.dtype.itemsize
                      + num_blocks * _SUBLANES * _LANES * 4)
    cost = pl.CostEstimate(flops=8 * n * c,
                           transcendentals=2 * n * c,
                           bytes_accessed=bytes_accessed)

    partials = pl.pallas_call(
        kernel,
        out_shape=out_shape,
        grid=(num_blocks,),
        in_specs=[
            pl.BlockSpec((tile, c), lambda i: (i, 0)),
            pl.BlockSpec((tile, c), lambda i: (i, 0)),
        ],
        out_specs=pl.BlockSpec((1, _SUBLANES, _LANES), lambda i: (i, 0, 0)),
        compiler_params=pltpu.CompilerParams(
            dimension_semantics=("parallel",),
            vmem_limit_bytes=vmem_limit),
        cost_estimate=cost,
    )(x, t)

    sum_x = jnp.sum(partials[:, 0, 0])
    sum_bce = jnp.sum(partials[:, 0, 1])

    c_f = jnp.float32(c)
    if reduction == 'sum':
        loss = -sum_x
        bce = sum_bce
    elif reduction == 'mean':
        loss = -sum_x / jnp.float32(n)
        bce = sum_bce / jnp.float32(n * c)
    else:
        # TODO(synk): reduction='none' (unreduced per-row loss + elementwise
        # BCE) has no single-scalar output; only 'mean' and 'sum' implemented.
        raise NotImplementedError("reduction='none' is not supported")
    return (loss * eps / c_f + (1.0 - eps) * bce).astype(jnp.float32)


def _label_smoothing_bce_ref(output, target, *, eps=EPS, reduction='mean'):
    """Pure-JAX reference mirroring the PyTorch module."""
    c = output.shape[-1]
    p = output.astype(jnp.float32).reshape(-1, c)
    t = target.astype(jnp.float32).reshape(-1, c)
    log_p = jnp.maximum(jnp.log(p), _LOG_CLAMP)
    log_1mp = jnp.maximum(jnp.log(1.0 - p), _LOG_CLAMP)
    bce_el = -(t * log_p + (1.0 - t) * log_1mp)
    if reduction == 'sum':
        loss = -jnp.sum(p)
        bce = jnp.sum(bce_el)
    else:  # mean
        loss = jnp.mean(-jnp.sum(p, axis=-1))
        bce = jnp.mean(bce_el)
    return loss * eps / c + (1 - eps) * bce


if __name__ == "__main__":
    key = jax.random.PRNGKey(0)
    k_x, k_t, k_x2, k_t2 = jax.random.split(key, 4)

    # Small case: 13 rows (non-multiple of 8 -> exercises the in-kernel OOB
    # masking and the >=2-block split), 32 channels.  BCE expects probabilities.
    N, C = 13, 32
    probs = jax.nn.sigmoid(jax.random.normal(k_x, (N, C), dtype=jnp.float32))
    target = jax.random.bernoulli(k_t, 0.5, (N, C)).astype(jnp.float32)

    loss_mean = label_smoothing_bce(probs, target, reduction='mean')
    loss_mean_mb = label_smoothing_bce(probs, target, reduction='mean', tile_n=8)
    loss_sum_mb = label_smoothing_bce(probs, target, reduction='sum', tile_n=8)

    # Medium case: exercises multi-chunk compute inside a block, a partially
    # out-of-bounds last block, and a non-f32 target dtype (cast in-kernel).
    N2, C2 = 1030, 160
    probs2 = jax.nn.sigmoid(jax.random.normal(k_x2, (N2, C2), dtype=jnp.float32))
    target2 = jax.random.bernoulli(k_t2, 0.5, (N2, C2)).astype(jnp.bfloat16)

    loss2_mean = label_smoothing_bce(probs2, target2, reduction='mean')
    loss2_mean_mb = label_smoothing_bce(probs2, target2, reduction='mean',
                                        tile_n=1040)
    loss2_sum = label_smoothing_bce(probs2, target2, reduction='sum',
                                    tile_n=1040)

    jax.block_until_ready((loss_mean, loss_mean_mb, loss_sum_mb,
                           loss2_mean, loss2_mean_mb, loss2_sum))

    ref_mean = _label_smoothing_bce_ref(probs, target, reduction='mean')
    ref_sum = _label_smoothing_bce_ref(probs, target, reduction='sum')
    ref2_mean = _label_smoothing_bce_ref(probs2, target2, reduction='mean')
    ref2_sum = _label_smoothing_bce_ref(probs2, target2, reduction='sum')

    assert jnp.allclose(loss_mean, ref_mean, rtol=1e-5, atol=1e-5), (loss_mean, ref_mean)
    assert jnp.allclose(loss_mean_mb, ref_mean, rtol=1e-5, atol=1e-5), (loss_mean_mb, ref_mean)
    assert jnp.allclose(loss_sum_mb, ref_sum, rtol=1e-5, atol=1e-5), (loss_sum_mb, ref_sum)
    assert jnp.allclose(loss2_mean, ref2_mean, rtol=1e-4, atol=1e-4), (loss2_mean, ref2_mean)
    assert jnp.allclose(loss2_mean_mb, ref2_mean, rtol=1e-4, atol=1e-4), (loss2_mean_mb, ref2_mean)
    assert jnp.allclose(loss2_sum, ref2_sum, rtol=1e-4, atol=1e-4), (loss2_sum, ref2_sum)

    print("KERNEL_OK")
</pallas_src>

<mosaic_0001>
module attributes {stable_mosaic.version = 11 : i64} {
  func.func @_ls_bce_partial_kernel(%arg0: i32, %arg1: memref<8x32xf32, #tpu.memory_space<vmem>>, %arg2: memref<8x32xf32, #tpu.memory_space<vmem>>, %arg3: memref<1x8x128xf32, #tpu.memory_space<vmem>>) attributes {dimension_semantics = [#tpu.dimension_semantics<parallel>], iteration_bounds = array<i64: 2>, scalar_prefetch = 0 : i64, scratch_operands = 0 : i64, tpu.core_type = #tpu.core_type<tc>, window_params = [{transform_indices = @transform_0, window_bounds = array<i64: 8, 32>}, {transform_indices = @transform_1, window_bounds = array<i64: 8, 32>}, {transform_indices = @transform_2, window_bounds = array<i64: 1, 8, 128>}]} {
    %cst = arith.constant 0.000000e+00 : f32
    %0 = vector.broadcast %cst : f32 to vector<1x1xf32>
    %c0_i32 = arith.constant 0 : i32
    %c8_i32 = arith.constant 8 : i32
    %1 = arith.muli %c0_i32, %c8_i32 : i32
    %2 = tpu.assume_multiple %1, 8 : i32
    %3 = arith.index_cast %2 : i32 to index
    %c0 = arith.constant 0 : index
    %4 = vector.load %arg1[%3, %c0] : memref<8x32xf32, #tpu.memory_space<vmem>>, vector<8x32xf32>
    %5 = arith.index_cast %2 : i32 to index
    %c0_0 = arith.constant 0 : index
    %6 = vector.load %arg2[%5, %c0_0] : memref<8x32xf32, #tpu.memory_space<vmem>>, vector<8x32xf32>
    %c8_i32_1 = arith.constant 8 : i32
    %7 = arith.muli %arg0, %c8_i32_1 : i32
    %8 = arith.addi %7, %2 : i32
    %9 = tpu.iota {dimensions = array<i32: 0>} : vector<8x1xi32>
    %10 = vector.broadcast %8 : i32 to vector<8x1xi32>
    %11 = arith.addi %10, %9 : vector<8x1xi32>
    %c13_i32 = arith.constant 13 : i32
    %12 = vector.broadcast %c13_i32 : i32 to vector<8x1xi32>
    %13 = arith.cmpi slt, %11, %12 : vector<8x1xi32>
    %cst_2 = arith.constant 5.000000e-01 : f32
    %14 = vector.shape_cast %13 : vector<8x1xi1> to vector<8x1xi1>
    %15 = vector.broadcast %14 : vector<8x1xi1> to vector<8x32xi1>
    %16 = vector.broadcast %cst_2 : f32 to vector<8x32xf32>
    %17 = arith.select %15, %4, %16 : vector<8x32xi1>, vector<8x32xf32>
    %cst_3 = arith.constant 0.000000e+00 : f32
    %18 = vector.shape_cast %13 : vector<8x1xi1> to vector<8x1xi1>
    %19 = vector.broadcast %18 : vector<8x1xi1> to vector<8x32xi1>
    %20 = vector.broadcast %cst_3 : f32 to vector<8x32xf32>
    %21 = arith.select %19, %6, %20 : vector<8x32xi1>, vector<8x32xf32>
    %22 = math.log %17 : vector<8x32xf32>
    %cst_4 = arith.constant -1.000000e+02 : f32
    %23 = vector.broadcast %cst_4 : f32 to vector<8x32xf32>
    %24 = arith.maximumf %22, %23 : vector<8x32xf32>
    %cst_5 = arith.constant 1.000000e+00 : f32
    %25 = vector.broadcast %cst_5 : f32 to vector<8x32xf32>
    %26 = arith.subf %25, %17 : vector<8x32xf32>
    %27 = math.log %26 : vector<8x32xf32>
    %cst_6 = arith.constant -1.000000e+02 : f32
    %28 = vector.broadcast %cst_6 : f32 to vector<8x32xf32>
    %29 = arith.maximumf %27, %28 : vector<8x32xf32>
    %30 = arith.mulf %21, %24 : vector<8x32xf32>
    %cst_7 = arith.constant 1.000000e+00 : f32
    %31 = vector.broadcast %cst_7 : f32 to vector<8x32xf32>
    %32 = arith.subf %31, %21 : vector<8x32xf32>
    %33 = arith.mulf %32, %29 : vector<8x32xf32>
    %34 = arith.addf %30, %33 : vector<8x32xf32>
    %cst_8 = arith.constant 0.000000e+00 : f32
    %35 = vector.broadcast %cst_8 : f32 to vector<8x32xf32>
    %36 = arith.subf %35, %34 : vector<8x32xf32>
    %cst_9 = arith.constant 0.000000e+00 : f32
    %37 = vector.shape_cast %13 : vector<8x1xi1> to vector<8x1xi1>
    %38 = vector.broadcast %37 : vector<8x1xi1> to vector<8x32xi1>
    %39 = vector.broadcast %cst_9 : f32 to vector<8x32xf32>
    %40 = arith.select %38, %17, %39 : vector<8x32xi1>, vector<8x32xf32>
    %41 = vector.shape_cast %40 : vector<8x32xf32> to vector<1x8x32xf32>
    %cst_10 = arith.constant dense<0.000000e+00> : vector<1xf32>
    %42 = vector.multi_reduction <add>, %41, %cst_10 [1, 2] : vector<1x8x32xf32> to vector<1xf32>
    %43 = vector.shape_cast %42 : vector<1xf32> to vector<1x1x1xf32>
    %44 = vector.extract %43[0, 0, 0] : f32 from vector<1x1x1xf32>
    %45 = vector.broadcast %44 : f32 to vector<1x1xf32>
    %46 = arith.addf %0, %45 : vector<1x1xf32>
    %cst_11 = arith.constant 0.000000e+00 : f32
    %47 = vector.shape_cast %13 : vector<8x1xi1> to vector<8x1xi1>
    %48 = vector.broadcast %47 : vector<8x1xi1> to vector<8x32xi1>
    %49 = vector.broadcast %cst_11 : f32 to vector<8x32xf32>
    %50 = arith.select %48, %36, %49 : vector<8x32xi1>, vector<8x32xf32>
    %51 = vector.shape_cast %50 : vector<8x32xf32> to vector<1x8x32xf32>
    %cst_12 = arith.constant dense<0.000000e+00> : vector<1xf32>
    %52 = vector.multi_reduction <add>, %51, %cst_12 [1, 2] : vector<1x8x32xf32> to vector<1xf32>
    %53 = vector.shape_cast %52 : vector<1xf32> to vector<1x1x1xf32>
    %54 = vector.extract %53[0, 0, 0] : f32 from vector<1x1x1xf32>
    %55 = vector.broadcast %54 : f32 to vector<1x1xf32>
    %56 = arith.addf %0, %55 : vector<1x1xf32>
    %c1_i32 = arith.constant 1 : i32
    %57 = tpu.iota {dimensions = array<i32: 2>} : vector<1x8x128xi32>
    %c0_i32_13 = arith.constant 0 : i32
    %58 = vector.broadcast %c0_i32_13 : i32 to vector<1x8x128xi32>
    %59 = arith.cmpi eq, %57, %58 : vector<1x8x128xi32>
    %60 = vector.extract %46[0, 0] : f32 from vector<1x1xf32>
    %c1_i32_14 = arith.constant 1 : i32
    %61 = vector.broadcast %c1_i32_14 : i32 to vector<1x8x128xi32>
    %62 = arith.cmpi eq, %57, %61 : vector<1x8x128xi32>
    %63 = vector.extract %56[0, 0] : f32 from vector<1x1xf32>
    %cst_15 = arith.constant 0.000000e+00 : f32
    %64 = vector.broadcast %63 : f32 to vector<1x8x128xf32>
    %65 = vector.broadcast %cst_15 : f32 to vector<1x8x128xf32>
    %66 = arith.select %62, %64, %65 : vector<1x8x128xi1>, vector<1x8x128xf32>
    %67 = vector.broadcast %60 : f32 to vector<1x8x128xf32>
    %68 = arith.select %59, %67, %66 : vector<1x8x128xi1>, vector<1x8x128xf32>
    %c0_16 = arith.constant 0 : index
    %c0_17 = arith.constant 0 : index
    %c0_18 = arith.constant 0 : index
    %69 = vector.load %arg3[%c0_16, %c0_17, %c0_18] : memref<1x8x128xf32, #tpu.memory_space<vmem>>, vector<1x8x128xf32>
    tpu.vector_store %arg3[%c0_16, %c0_17, %c0_18], %68 {strides = array<i32>} : memref<1x8x128xf32, #tpu.memory_space<vmem>>, vector<1x8x128xf32>,
    return
  }
  func.func @transform_0(%arg0: i32) -> (i32, i32) {
    %c0_i32 = arith.constant 0 : i32
    %c0_i32_0 = arith.constant 0 : i32
    return %arg0, %c0_i32 : i32, i32
  }
  func.func @transform_1(%arg0: i32) -> (i32, i32) {
    %c0_i32 = arith.constant 0 : i32
    %c0_i32_0 = arith.constant 0 : i32
    return %arg0, %c0_i32 : i32, i32
  }
  func.func @transform_2(%arg0: i32) -> (i32, i32, i32) {
    %c0_i32 = arith.constant 0 : i32
    %c0_i32_0 = arith.constant 0 : i32
    %c0_i32_1 = arith.constant 0 : i32
    return %arg0, %c0_i32, %c0_i32_0 : i32, i32, i32
  }
}

</mosaic_0001>

<bundles_post_ra>
// kernel: tpu_custom_call.1
= control target key start
LH: loop header
LB: loop body
LE: loop exit
PB: predicated region body
PF: predicated region fallthrough
CT: control target
= control target key end

     0   :  { %7 = vsyncpa [#allocation3], 0  ;;  %s812_s0 = inlined_call_operand.hbm [shape: f32[13,32], index: 0, kind: input, shape index: {}]   ;;  %s813_s1 = inlined_call_operand.hbm [shape: f32[13,32], index: 1, kind: input, shape index: {}]   ;;  %s814_s2 = inlined_call_operand.hbm [shape: f32[2,8,128], index: 2, kind: output, shape index: {}]  }
   0x1   :  { %9 = vsyncpa [#allocation3 + $0x1], 0 }
   0x2   :  { %10 = vsyncpa [#allocation6], 0 }
   0x3   :  { %12 = vsyncpa [#allocation6 + $0x1], 0 }
   0x4   :  { %13 = vsyncpa [#allocation4], 0 }
   0x5   :  { %15 = vsyncpa [#allocation4 + $0x1], 0  ;;  %s591_s9 = smov 0   ;;  %s593_s10 = smov 0  }
   0x6   :  { %s595_s11 = smov 0   ;;  %s597_s12 = smov 0  }
   0x7 LB: > { %s612_s13 = sadd.s32 4294967295, %s571_s12   ;;  %s366_s14 = sadd.s32 4294967294, %s571_s12   ;;  %s571_s12 = sphi %s597_s12, %s833_s12   ;;  %s567_s11 = sphi %s595_s11, %s832_s11   ;;  %s563_s10 = sphi %s593_s10, %s831_s10   ;;  %s559_s9 = sphi %s591_s9, %s830_s9  }
   0x8   : > { %s616_s15 = sadd.s32 1, %s571_s12   ;;  %s28_s16 = sadd.s32 1, %s567_s11 }
   0x9   : > { %s25_s17 = ssub.s32 %s571_s12, %s616_s15  ;;  %p35_p0 = scmp.ne.s32.totalorder %s567_s11, %s563_s10 }
   0xa   : > { %p26_p1 = scmp.eq.s32.totalorder %s25_s17, 0  ;;  %p36_p2 = scmp.eq.s32.totalorder %s571_s12, 0 }
   0xb   : > { %p41_p3 = scmp.ne.s32.totalorder %s563_s10, %s559_s9  ;;  %p42_p4 = scmp.eq.s32.totalorder %s612_s13, 0 }
   0xc   : > { %s628_s18 = scalar_select %p26_p1, %s567_s11, %s28_s16  }
   0xd   : > { %p630_p5 = por %p36_p2, %p35_p0  ;;  %p634_p6 = por %p42_p4, %p41_p3 }
   0xe   : > { %p91_p7 = scmp.eq.s32.totalorder %s612_s13, 1  ;;  %p97_p8 = scmp.eq.s32.totalorder %s366_s14, 1 }
   0xf   : > { %s818_s20 = scalar_select %p634_p6, 1, 0 }
  0x10   : > { %p403_p10 = scmp.lt.s32.totalorder %s571_s12, 2  ;;  %p641_p11 = por %p91_p7, %p35_p0 }
  0x11   : > { %p645_p12 = por %p97_p8, %p41_p3  ;;  %s650_s23 = sand.u32 1, %s567_s11  }
  0x12   : > { %s819_s21 = scalar_select %p641_p11, 1, 0 }
  0x13   : > { %s820_s22 = scalar_select %p645_p12, 1, 0 }
  0x14   : > { %s370_s24 = sshll.u32 %s571_s12, 7  ;;  %s369_s25 = sshll.u32 %s650_s23, 3 }
  0x15   : > { %s659_s28 = scalar_lea.hbm %s812_s0, %s370_s24  ;;  %s121_s29 = scalar_lea.vmem [#allocation2], %s369_s25 }
  0x16   : > { %s128_s30 = sshll.u32 %s121_s29, 4  ;;  %p665_p13 = pnand %p403_p10, %p630_p5  ;;  %s669_s30 = int_to_ptr.vmem [resolvable:$true] %s128_s30 }
  0x17   : > { %s118_s4 = scalar_lea.sflag [#allocation3], %s650_s23  ;;  %s441_s5 = scalar_lea.hbm %s659_s28, 128 }
  0x18   : > { %p442_p2 = scmp.ne.s32.totalorder %s659_s28, %s441_s5  ;;  %p443_p3 = pneg %p665_p13 }
  0x19   : > { %s446_s8 = scalar_lea.hbm %s812_s0, 256  ;;  %p447_p5 = scmp.lt.u32.totalorder %s659_s28, %s812_s0 }
  0x1a   : > { %p444_p4 = pnand %p443_p3, %p442_p2  ;;  %p448_p8 = scmp.lt.u32.totalorder %s446_s8, %s441_s5 }
  0x1b   : > { %p450_p9 = scmp.lt.u32.totalorder %s441_s5, %s659_s28 }
  0x1c   : > { %p445_p7 = pneg %p444_p4  ;;  %p449_p10 = por %p448_p8, %p447_p5 }
  0x1e   : > { %p451_p0 = por %p450_p9, %p449_p10 }
  0x20   : > { %p452_p1 = pnand %p451_p0, %p445_p7 }
  0x22   : > { %455 = shalt.err (!%p452_p1)
}
  0x23   : > { %s456_s17 = scalar_lea.vmem %s669_s30, 128  ;;  %s573_s19 = smov [#allocation2]  }
  0x24   : > { %p457_p2 = scmp.ne.s32.totalorder %s669_s30, %s456_s17  ;;  %s461_s26 = sshll.u32 %s573_s19, 4  ;;  %s462_s26 = int_to_ptr.vmem [resolvable:$false] %s461_s26 }
  0x25   : > { %s463_s27 = scalar_lea.vmem %s462_s26, 256  ;;  %p464_p11 = scmp.lt.s32.totalorder %s669_s30, %s462_s26 }
  0x26   : > { %p459_p4 = pnand %p457_p2, %p443_p3  ;;  %p465_p5 = scmp.lt.s32.totalorder %s463_s27, %s456_s17 }
  0x28   : > { %p460_p12 = pneg %p459_p4  ;;  %p466_p8 = por %p465_p5, %p464_p11 }
  0x2a   : > { %p467_p9 = pnand %p466_p8, %p460_p12 }
  0x2c   : > { %470 = shalt.err (!%p467_p9)
}
  0x2d   : > { %395 = dma.hbm_to_vmem [thread:$0]  (!%p665_p13), %s659_s28, 128, %s669_s30, %s118_s4  }
  0x2e   : > { %p822_p0 = scmp.lt.s32.totalorder %s571_s12, 3  ;;  %p823_p1 = scmp.ge.s32.totalorder %s571_s12, 1 }
  0x2f   : > { %s712_s7 = scalar_lea.hbm %s813_s1, %s370_s24  ;;  %s139_s8 = scalar_lea.vmem [#allocation5], %s369_s25 }
  0x30   : > { %p703_p7 = pnand %p823_p1, %p822_p0  ;;  %s146_s14 = sshll.u32 %s139_s8, 4  ;;  %s147_s14 = int_to_ptr.vmem [resolvable:$true] %s146_s14 }
  0x31   : > { %s136_s28 = scalar_lea.sflag [#allocation6], %s650_s23  ;;  %s471_s30 = scalar_lea.hbm %s712_s7, 128 }
  0x32   : > { %s824_s29 = scalar_select %p703_p7, 1, 0 }
  0x33   : > { %p472_p11 = scmp.ne.s32.totalorder %s712_s7, %s471_s30  ;;  %s476_s24 = scalar_lea.hbm %s813_s1, 256 }
  0x34   : > { %p477_p2 = scmp.lt.u32.totalorder %s712_s7, %s813_s1  ;;  %p478_p4 = scmp.lt.u32.totalorder %s476_s24, %s471_s30 }
  0x35   : > { %p474_p12 = pnand %p472_p11, %p443_p3  ;;  %p480_p8 = scmp.lt.u32.totalorder %s471_s30, %s712_s7 }
  0x36   : > { %p479_p5 = por %p478_p4, %p477_p2 }
  0x37   : > { %p475_p10 = pneg %p474_p12 }
  0x38   : > { %p481_p9 = por %p480_p8, %p479_p5 }
  0x3a   : > { %p482_p0 = pnand %p481_p9, %p475_p10 }
  0x3c   : > { %485 = shalt.err (!%p482_p0)
}
  0x3d   : > { %s486_s23 = scalar_lea.vmem %s147_s14, 128  ;;  %s574_s25 = smov [#allocation5]  }
  0x3e   : > { %p487_p1 = scmp.ne.s32.totalorder %s147_s14, %s486_s23  ;;  %s491_s26 = sshll.u32 %s574_s25, 4  ;;  %s492_s26 = int_to_ptr.vmem [resolvable:$false] %s491_s26 }
  0x3f   : > { %s493_s27 = scalar_lea.vmem %s492_s26, 256  ;;  %p494_p6 = scmp.lt.s32.totalorder %s147_s14, %s492_s26 }
  0x40   : > { %p489_p11 = pnand %p487_p1, %p443_p3  ;;  %p495_p7 = scmp.lt.s32.totalorder %s493_s27, %s486_s23 }
  0x42   : > { %p490_p12 = pneg %p489_p11  ;;  %p496_p2 = por %p495_p7, %p494_p6 }
  0x44   : > { %p497_p4 = pnand %p496_p2, %p490_p12 }
  0x46   : > { %500 = shalt.err (!%p497_p4)
}
  0x47   : > { %398 = dma.hbm_to_vmem [thread:$0]  (!%p665_p13), %s712_s7, 128, %s147_s14, %s136_s28  }
  0x48   : > { %p825_p10 = scmp.ne.s32.totalorder %s824_s29, 0 }
  0x49   : > { %s739_s5 = sand.u32 (!%p825_p10), 1, %s563_s10   ;;  %p826_p6 = scmp.ne.s32.totalorder (!%p825_p10), %s818_s20, 0 }
  0x4a   : > { %155 = sbr.rel (%p825_p10) target bundleno = 338 (0x152), region = 28  ;;  %s742_s6 = sshll.u32 (!%p825_p10), %s739_s5, 3 }
  0x4b   : > { %s158_s8 = scalar_lea.sflag (!%p825_p10), [#allocation3], %s739_s5  ;;  %s161_s30 = scalar_lea.vmem (!%p825_p10), [#allocation2], %s742_s6 }
  0x51   : > { %546 = dma.done.wait (%p826_p6), %s158_s8, 128  }
  0x52   : > { %548 = vsyncadd (%p826_p6), %s158_s8, 4294967168  ;;  %s167_s3 = scalar_lea.sflag [#allocation6], %s739_s5  ;;  %s170_s29 = scalar_lea.vmem [#allocation5], %s742_s6 }
  0x53   : > { %550 = dma.done.wait (%p826_p6), %s167_s3, 128  }
  0x54   : > { %552 = vsyncadd (%p826_p6), %s167_s3, 4294967168  ;;  %s377_s7 = sshll.u32 %s612_s13, 3  ;;  %v200_v0 = vlaneseq  ;;  %vm222_vm1 = vcmask 261120   ;;  %v196_v4 = vld [vmem:[%s161_s30] sm:$0xff]  ;;  %v197_v9 = vld [vmem:[%s170_s29] sm:$0xff]  ;;  %s379_s20 = sshll.u32 %s612_s13, 7 }
  0x55   : > { %v202_v1 = vstv %s377_s7  ;;  %s195_s28 = scalar_lea.vmem [#allocation7], %s742_s6  ;;  %s768_s19 = scalar_lea.hbm %s814_s2, %s379_s20 }
  0x56   : > { %v201_v2 = vshrl.u32 %v200_v0, 7  ;;  %v249_v38 = vand.u32 127, %v200_v0  ;;  %s273_s4 = sshll.u32 %s195_s28, 4  ;;  %s260_s13 = scalar_lea.sflag [#allocation4], %s739_s5  ;;  %s770_s4 = int_to_ptr.vmem [resolvable:$true] %s273_s4 }
  0x57   : > { %s501_s23 = scalar_lea.vmem %s770_s4, 128  ;;  %p827_p3 = scmp.ne.s32.totalorder %s819_s21, 0 }
  0x58   : > { %v203_v3 = vadd.s32 %v202_v1, %v201_v2  ;;  %vm252_vm2 = vcmp.eq.s32.totalorder %v249_v38, 1  ;;  %vm250_vm3 = vcmp.eq.s32.totalorder %v249_v38, 0  ;;  %p502_p13 = scmp.ne.s32.totalorder %s770_s4, %s501_s23  ;;  %s575_s25 = smov [#allocation7]  }
  0x59   : > { %s505_s26 = sshll.u32 %s575_s25, 4  ;;  %s506_s26 = int_to_ptr.vmem [resolvable:$false] %s505_s26 }
  0x5a   : > { %vm204_vm0 = vcmp.lt.s32.totalorder %v203_v3, 13  ;;  %p503_p7 = pnand %p502_p13, %p827_p3  ;;  %s507_s27 = scalar_lea.vmem %s506_s26, 256 }
  0x5b   : > { %v221_v5 = vsel %vm204_vm0, %v196_v4, 0.0  ;;  %v207_v6 = vsel %vm204_vm0, %v196_v4, 0.5  ;;  %v208_v11 = vsel %vm204_vm0, %v197_v9, 0.0  ;;  %p508_p8 = scmp.lt.s32.totalorder %s770_s4, %s506_s26  ;;  %p509_p9 = scmp.lt.s32.totalorder %s507_s27, %s501_s23 }
  0x5c   : > { %v223_v7 = vsel %vm222_vm1, %v221_v5, 0.0  ;;  %437 = vlog2.f32 %v207_v6  ;;  %v212_v8 = vsub.f32 1.0, %v207_v6  ;;  %v217_v16 = vsub.f32 1.0, %v208_v11  ;;  %p504_p5 = pneg %p503_p7 }
  0x5d   : > { %224 = vadd.xlane.f32.xlu0 %v223_v7  ;;  %p510_p0 = por %p509_p9, %p508_p8 }
  0x5e   : > { %439 = vlog2.f32 %v212_v8 }
  0x5f   : > { %p511_p1 = pnand %p510_p0, %p504_p5 }
  0x66   : > { %v438_v10 = vpop.eup %437 }
  0x67   : > { %v210_v12 = vmul.f32 0.6931472, %v438_v10 }
  0x68   : > { %v440_v13 = vpop.eup %439 }
  0x69   : > { %v211_v14 = vmax.f32 %v210_v12, -100.0  ;;  %v214_v15 = vmul.f32 0.6931472, %v440_v13 }
  0x6b   : > { %v215_v17 = vmax.f32 %v214_v15, -100.0  ;;  %v216_v18 = vmul.f32 %v211_v14, %v208_v11 }
  0x6d   : > { %v218_v19 = vmul.f32 %v217_v16, %v215_v17 }
  0x6f   : > { %v219_v20 = vadd.f32 %v218_v19, %v216_v18 }
  0x71   : > { %v220_v21 = vsub.f32 0.0, %v219_v20 }
  0x73   : > { %v235_v22 = vsel %vm204_vm0, %v220_v21, 0.0 }
  0x74   : > { %v236_v23 = vsel %vm222_vm1, %v235_v22, 0.0 }
  0x75   : > { %237 = vadd.xlane.f32.xlu0 %v236_v23 }
  0xea   : > { %v225_v24 = vpop.xlane.xlu0 %224 }
  0xeb   : > { %v226_v25 = vrot.slane %v225_v24, 4 }
  0xed   : > { %v227_v26 = vadd.f32 %v226_v25, %v225_v24 }
  0xef   : > { %v228_v27 = vrot.slane %v227_v26, 2 }
  0xf1   : > { %v229_v28 = vadd.f32 %v228_v27, %v227_v26 }
  0xf3   : > { %v230_v29 = vrot.slane %v229_v28, 1 }
  0xf5   : > { %v231_v30 = vadd.f32 %v230_v29, %v229_v28 }
  0xf7   : > { %382 = vpush %v231_v30 }
 0x102   : > { %v238_v31 = vpop.xlane.xlu0 %237 }
 0x103   : > { %v239_v32 = vrot.slane %v238_v31, 4 }
 0x105   : > { %v240_v33 = vadd.f32 %v239_v32, %v238_v31 }
 0x107   : > { %v241_v34 = vrot.slane %v240_v33, 2 }
 0x109   : > { %v242_v35 = vadd.f32 %v241_v34, %v240_v33 }
 0x10b   : > { %v243_v36 = vrot.slane %v242_v35, 1 }
 0x10d   : > { %v244_v37 = vadd.f32 %v243_v36, %v242_v35 }
 0x10f   : > { %384 = vpush %v244_v37 }
 0x128   : > { %s383_s14 = spop %382 }
 0x129   : > { %v256_v40 = vstv %s383_s14 }
 0x140   : > { %s385_s16 = spop %384 }
 0x141   : > { %v254_v39 = vstv %s385_s16 }
 0x142   : > { %v255_v41 = vsel %vm252_vm2, %v254_v39, 0.0 }
 0x143   : > { %v257_v42 = vsel %vm250_vm3, %v256_v40, %v255_v41 }
 0x144   : > { %258 = vst [vmem:[%s195_s28] sm:$0xff] %v257_v42 }
 0x145   : > { %514 = shalt.err (!%p511_p1)
}
 0x146   : > { %s515_s5 = scalar_lea.hbm %s768_s19, 128  ;;  %s519_s30 = scalar_lea.hbm %s814_s2, 256 }
 0x147   : > { %p516_p11 = scmp.ne.s32.totalorder %s768_s19, %s515_s5  ;;  %p520_p4 = scmp.lt.u32.totalorder %s768_s19, %s814_s2 }
 0x148   : > { %p521_p10 = scmp.lt.u32.totalorder %s519_s30, %s515_s5  ;;  %p523_p13 = scmp.lt.u32.totalorder %s515_s5, %s768_s19 }
 0x149   : > { %p517_p12 = pnand %p516_p11, %p827_p3 }
 0x14a   : > { %p522_p6 = por %p521_p10, %p520_p4 }
 0x14b   : > { %p518_p2 = pneg %p517_p12 }
 0x14c   : > { %p524_p7 = por %p523_p13, %p522_p6 }
 0x14e   : > { %p525_p5 = pnand %p524_p7, %p518_p2 }
 0x150   : > { %528 = shalt.err (!%p525_p5)
}
 0x151   : > { %390 = dma.vmem_to_hbm [thread:$0]  (%p827_p3), %s770_s4, 128, %s768_s19, %s260_s13  }
 0x152 PF: > { %s285_s7 = sand.u32 1, %s559_s9   ;;  %p828_p8 = scmp.ne.s32.totalorder %s820_s22, 0 }
 0x153   : > { %p829_p9 = scmp.ge.s32.totalorder %s571_s12, 2  ;;  %s286_s20 = scalar_lea.sflag [#allocation4], %s285_s7 }
 0x155   : > { %p400_p0 = pnand %p829_p9, %p828_p8 }
 0x157   : > { %554 = dma.done.wait (!%p400_p0), %s286_s20, 128  }
 0x158   : > { %556 = vsyncadd (!%p400_p0), %s286_s20, 4294967168  ;;  %p18_p1 = scmp.ge.s32.totalorder %s616_s15, 4   ;;  %s830_s9 = smov %s563_s10 }
 0x159   : > { %s831_s10 = smov %s567_s11  ;;  %s832_s11 = smov %s628_s18 }
 0x15a   : > { %s833_s12 = smov %s616_s15  ;;  %20 = sbr.rel (!%p18_p1) target bundleno = 7 (0x7), region = 86 }
 0x161   :  { %291 = vsyncpa [#allocation3], 1 }
 0x162   :  { %293 = vsyncpa [#allocation3 + $0x1], 1 }
 0x163   :  { %294 = vsyncpa [#allocation6], 1 }
 0x164   :  { %296 = vsyncpa [#allocation6 + $0x1], 1 }
 0x165   :  { %297 = vsyncpa [#allocation4], 1 }
 0x166   :  { %299 = vsyncpa [#allocation4 + $0x1], 1 }

</bundles_post_ra>
